<compile_context>
chip_gen: v6e
topology: v6e:2x2x1
jax: 0.10.0
libtpu: 0.0.40
codegen_flags: <defaults>
</compile_context>

<pallas_src>
import jax
import jax.numpy as jnp
from jax.experimental import pallas as pl
from jax.experimental.pallas import tpu as pltpu


def _outer_kernel(x_ref, si_ref, sj_ref, o_ref):
    # x_ref:  (TB, F*E)      flattened input block
    # si_ref: (F*E, E*E)     constant selection matrix (VMEM-resident)
    # sj_ref: (F*E, E*E)     constant selection matrix (VMEM-resident)
    # o_ref:  (TB, E*E)      lane-dense output block
    x2d = x_ref[...]
    p_i = jnp.dot(x2d, si_ref[...], preferred_element_type=jnp.float32)  # (TB, E*E)
    p_j = jnp.dot(x2d, sj_ref[...], preferred_element_type=jnp.float32)  # (TB, E*E)
    # out[:, i*E + j] = p_i * p_j  (row-major flatten of p^T @ p)
    o_ref[...] = (p_i * p_j).astype(o_ref.dtype)


def outer_pnn(x, *, block_b=2048):
    """x: (B, F, E) -> (B, E*E), matching torch Outer.forward."""
    B, F, E = x.shape
    FE, EE = F * E, E * E

    # Free layout change on contiguous HBM: (B, F, E) -> (B, F*E).
    x2d = x.reshape(B, FE)

    # Constant 0/1 selection matrices (built once in the wrapper, not per grid step):
    #   S_i[f*E + e, i*E + j] = 1 iff e == i   ->  x2d @ S_i gives p[b, i] at column i*E+j
    #   S_j[f*E + e, i*E + j] = 1 iff e == j   ->  x2d @ S_j gives p[b, j] at column i*E+j
    k_e = jnp.arange(FE) % E                      # embedding index of each flattened col
    m = jnp.arange(EE)
    sel_i = (k_e[:, None] == (m // E)[None, :]).astype(x.dtype)   # (FE, EE)
    sel_j = (k_e[:, None] == (m % E)[None, :]).astype(x.dtype)    # (FE, EE)

    # Rows per grid step. block_b is a multiple of 8 (f32 sublane); when B < block_b
    # the block equals the full batch dim, which is always a legal block shape.
    TB = min(block_b, B)
    grid = (pl.cdiv(B, TB),)

    itemsize = jnp.dtype(x.dtype).itemsize
    cost = pl.CostEstimate(
        flops=2 * 2 * B * FE * EE + B * EE,       # two matmuls + one elementwise mul
        transcendentals=0,
        bytes_accessed=(B * (FE + EE) + 2 * FE * EE) * itemsize,
    )

    out = pl.pallas_call(
        _outer_kernel,
        out_shape=jax.ShapeDtypeStruct((B, EE), x.dtype),
        grid_spec=pltpu.PrefetchScalarGridSpec(
            num_scalar_prefetch=0,
            grid=grid,
            in_specs=[
                pl.BlockSpec((TB, FE), lambda b: (b, 0)),
                pl.BlockSpec((FE, EE), lambda b: (0, 0)),   # resident across the grid
                pl.BlockSpec((FE, EE), lambda b: (0, 0)),   # resident across the grid
            ],
            out_specs=pl.BlockSpec((TB, EE), lambda b: (b, 0)),
        ),
        compiler_params=pltpu.CompilerParams(
            dimension_semantics=("parallel",),
            vmem_limit_bytes=32 * 1024 * 1024,
        ),
        cost_estimate=cost,
    )(x2d, sel_i, sel_j)
    return out


if __name__ == "__main__":
    key = jax.random.PRNGKey(0)
    B, F, E = 2, 4, 16                      # batch, num_fields, embed_dim
    x = jax.random.normal(key, (B, F, E), dtype=jnp.float32)

    y = outer_pnn(x)
    jax.block_until_ready(y)

    # pure-JAX reference check
    p = jnp.sum(x, axis=1, keepdims=True)                       # (B, 1, E)
    ref = jnp.matmul(jnp.transpose(p, (0, 2, 1)), p).reshape(B, -1)
    assert y.shape == (B, E * E)
    assert jnp.allclose(y, ref, atol=1e-5, rtol=1e-5)

    print("KERNEL_OK")
</pallas_src>

<mosaic_0001>
module attributes {stable_mosaic.version = 11 : i64} {
  func.func @_outer_kernel(%arg0: i32, %arg1: memref<2x64xf32, #tpu.memory_space<vmem>>, %arg2: memref<64x256xf32, #tpu.memory_space<vmem>>, %arg3: memref<64x256xf32, #tpu.memory_space<vmem>>, %arg4: memref<2x256xf32, #tpu.memory_space<vmem>>) attributes {dimension_semantics = [#tpu.dimension_semantics<parallel>], iteration_bounds = array<i64: 1>, scalar_prefetch = 0 : i64, scratch_operands = 0 : i64, tpu.core_type = #tpu.core_type<tc>, window_params = [{transform_indices = @transform_0, window_bounds = array<i64: 2, 64>}, {pipeline_mode = #tpu.pipeline_mode<synchronous>, transform_indices = @transform_1, window_bounds = array<i64: 64, 256>}, {pipeline_mode = #tpu.pipeline_mode<synchronous>, transform_indices = @transform_2, window_bounds = array<i64: 64, 256>}, {transform_indices = @transform_3, window_bounds = array<i64: 2, 256>}]} {
    %c0 = arith.constant 0 : index
    %c0_0 = arith.constant 0 : index
    %0 = vector.load %arg1[%c0, %c0_0] : memref<2x64xf32, #tpu.memory_space<vmem>>, vector<2x64xf32>
    %c0_1 = arith.constant 0 : index
    %c0_2 = arith.constant 0 : index
    %1 = vector.load %arg2[%c0_1, %c0_2] : memref<64x256xf32, #tpu.memory_space<vmem>>, vector<64x256xf32>
    %cst = arith.constant dense<0.000000e+00> : vector<2x256xf32>
    %2 = tpu.matmul %0, %1, %cst {dimension_numbers = #tpu.dot_dimension_numbers<[1], [0], [0], [1], [0, 0, 1, 1], [], []>} : vector<2x64xf32>, vector<64x256xf32>, vector<2x256xf32> -> vector<2x256xf32>
    %c0_3 = arith.constant 0 : index
    %c0_4 = arith.constant 0 : index
    %3 = vector.load %arg3[%c0_3, %c0_4] : memref<64x256xf32, #tpu.memory_space<vmem>>, vector<64x256xf32>
    %cst_5 = arith.constant dense<0.000000e+00> : vector<2x256xf32>
    %4 = tpu.matmul %0, %3, %cst_5 {dimension_numbers = #tpu.dot_dimension_numbers<[1], [0], [0], [1], [0, 0, 1, 1], [], []>} : vector<2x64xf32>, vector<64x256xf32>, vector<2x256xf32> -> vector<2x256xf32>
    %5 = arith.mulf %2, %4 : vector<2x256xf32>
    %c0_6 = arith.constant 0 : index
    %c0_7 = arith.constant 0 : index
    %6 = vector.load %arg4[%c0_6, %c0_7] : memref<2x256xf32, #tpu.memory_space<vmem>>, vector<2x256xf32>
    tpu.vector_store %arg4[%c0_6, %c0_7], %5 {strides = array<i32>} : memref<2x256xf32, #tpu.memory_space<vmem>>, vector<2x256xf32>,
    return
  }
  func.func @transform_0(%arg0: i32) -> (i32, i32) {
    %c0_i32 = arith.constant 0 : i32
    %c0_i32_0 = arith.constant 0 : i32
    return %arg0, %c0_i32 : i32, i32
  }
  func.func @transform_1(%arg0: i32) -> (i32, i32) {
    %c0_i32 = arith.constant 0 : i32
    %c0_i32_0 = arith.constant 0 : i32
    %c0_i32_1 = arith.constant 0 : i32
    return %c0_i32, %c0_i32_0 : i32, i32
  }
  func.func @transform_2(%arg0: i32) -> (i32, i32) {
    %c0_i32 = arith.constant 0 : i32
    %c0_i32_0 = arith.constant 0 : i32
    %c0_i32_1 = arith.constant 0 : i32
    return %c0_i32, %c0_i32_0 : i32, i32
  }
  func.func @transform_3(%arg0: i32) -> (i32, i32) {
    %c0_i32 = arith.constant 0 : i32
    %c0_i32_0 = arith.constant 0 : i32
    return %arg0, %c0_i32 : i32, i32
  }
}

</mosaic_0001>

<bundles_post_ra>
// kernel: tpu_custom_call.1
= control target key start
LH: loop header
LB: loop body
LE: loop exit
PB: predicated region body
PF: predicated region fallthrough
CT: control target
= control target key end

     0   :  { %8 = vsyncpa [#allocation3], 0  ;;  %s398_s0 = inlined_call_operand.hbm [shape: f32[2,64], index: 0, kind: input, shape index: {}]   ;;  %s399_s1 = inlined_call_operand.hbm [shape: f32[64,256], index: 1, kind: input, shape index: {}]   ;;  %s400_s2 = inlined_call_operand.hbm [shape: f32[64,256], index: 2, kind: input, shape index: {}]   ;;  %s401_s3 = inlined_call_operand.hbm [shape: f32[2,256], index: 3, kind: output, shape index: {}]  }
   0x1   :  { %9 = vsyncpa [#allocation6], 0 }
   0x2   :  { %10 = vsyncpa [#allocation4], 0  ;;  %s359_s12 = smov [#allocation5]  }
   0x3   :  { %s26_s13 = sshll.u32 %s359_s12, 4  ;;  %s27_s13 = int_to_ptr.vmem [resolvable:$true] %s26_s13 }
   0x4   :  { %s281_s14 = scalar_lea.vmem %s27_s13, 2048  ;;  %p286_p1 = scmp.lt.s32.totalorder %s27_s13, %s27_s13 }
   0x5   :  { %p282_p0 = scmp.ne.s32.totalorder %s27_s13, %s281_s14  ;;  %p287_p2 = scmp.lt.s32.totalorder %s281_s14, %s281_s14 }
   0x7   :  { %p288_p3 = por %p287_p2, %p286_p1 }
   0x9   :  { %p289_p4 = pnand %p288_p3, %p282_p0 }
   0xb   :  { %292 = shalt.err (!%p289_p4)
}
   0xc   :  { %s360_s15 = smov 256   ;;  %s361_s16 = smov 16  }
   0xd   :  { %32 = dma.hbm_to_vmem [thread:$0]  %s399_s1, 2048, %s27_s13, [#allocation6], %s360_s15, %s360_s15, %s361_s16  }
   0xe   :  { %s362_s19 = smov [#allocation2]   ;;  %s363_s21 = smov [#allocation7]  }
   0xf   :  { %s17_s20 = sshll.u32 %s362_s19, 4  ;;  %s38_s22 = sshll.u32 %s363_s21, 4  ;;  %s18_s20 = int_to_ptr.vmem [resolvable:$true] %s17_s20  ;;  %s39_s22 = int_to_ptr.vmem [resolvable:$true] %s38_s22 }
  0x10   :  { %s301_s23 = scalar_lea.vmem %s18_s20, 32  ;;  %p306_p6 = scmp.lt.s32.totalorder %s18_s20, %s18_s20 }
  0x11   :  { %p302_p5 = scmp.ne.s32.totalorder %s18_s20, %s301_s23  ;;  %p307_p7 = scmp.lt.s32.totalorder %s301_s23, %s301_s23 }
  0x13   :  { %p308_p8 = por %p307_p7, %p306_p6 }
  0x15   :  { %p309_p9 = pnand %p308_p8, %p302_p5 }
  0x17   :  { %312 = shalt.err (!%p309_p9)
}
  0x18   :  { %20 = dma.hbm_to_vmem [thread:$0]  %s398_s0, 32, %s18_s20, [#allocation3]  }
  0x19   :  { %s321_s26 = scalar_lea.vmem %s39_s22, 2048  ;;  %p326_p11 = scmp.lt.s32.totalorder %s39_s22, %s39_s22 }
  0x1a   :  { %p322_p10 = scmp.ne.s32.totalorder %s39_s22, %s321_s26  ;;  %p327_p12 = scmp.lt.s32.totalorder %s321_s26, %s321_s26 }
  0x1c   :  { %p328_p13 = por %p327_p12, %p326_p11 }
  0x1e   :  { %p329_p0 = pnand %p328_p13, %p322_p10 }
  0x20   :  { %332 = shalt.err (!%p329_p0)
}
  0x21   :  { %44 = dma.hbm_to_vmem [thread:$0]  %s400_s2, 2048, %s39_s22, [#allocation6], %s360_s15, %s360_s15, %s361_s16  }
  0x22   :  { %353 = dma.done.wait [#allocation3], 32  }
  0x23   :  { %354 = vsyncadd [#allocation3], 4294967264 }
  0x24   :  { %355 = dma.done.wait [#allocation6], 4096  }
  0x25   :  { %356 = vsyncadd [#allocation6], 4294963200  ;;  %v364_v0 = vmov 0.0   ;;  %v70_v1 = vld [vmem:[#allocation5 + $0x78] sm:$0xff]  ;;  %v69_v3 = vld [vmem:[#allocation5 + $0x70] sm:$0xff]  ;;  %vm71_vm0 = vcmask 523264  }
  0x26   :  { %139 = vmatprep.mubr.f32.mxu0 %v364_v0  ;;  %226 = vmatprep.mubr.f32.mxu1 %v364_v0  ;;  %v161_v2 = vld [vmem:[#allocation7 + $0x78] sm:$0xff]  ;;  %v160_v4 = vld [vmem:[#allocation7 + $0x70] sm:$0xff]  ;;  %v68_v5 = vld [vmem:[#allocation5 + $0x68] sm:$0xff]  ;;  %s365_s0 = smov [#allocation8]  }
  0x27   :  { %91 = vmatprep.subr.mxu0 %v70_v1  ;;  %178 = vmatprep.subr.mxu1 %v161_v2  ;;  %v159_v6 = vld [vmem:[#allocation7 + $0x68] sm:$0xff]  ;;  %v67_v7 = vld [vmem:[#allocation5 + $0x60] sm:$0xff]  ;;  %v66_v9 = vld [vmem:[#allocation5 + $0x58] sm:$0xff]  ;;  %s253_s2 = sshll.u32 %s365_s0, 4  ;;  %s254_s2 = int_to_ptr.vmem [resolvable:$true] %s253_s2 }
  0x28   :  { %92 = vmatpush1.msra.mxu0 %v69_v3  ;;  %179 = vmatpush1.msra.mxu1 %v160_v4  ;;  %v158_v8 = vld [vmem:[#allocation7 + $0x60] sm:$0xff]  ;;  %v157_v10 = vld [vmem:[#allocation7 + $0x58] sm:$0xff]  ;;  %v65_v11 = vld [vmem:[#allocation5 + $0x50] sm:$0xff]  ;;  %s333_s28 = scalar_lea.vmem %s254_s2, 64  ;;  %p338_p2 = scmp.lt.s32.totalorder %s254_s2, %s254_s2 }
  0x29   :  { %93 = vmatprep.subr.mxu0 %v68_v5  ;;  %180 = vmatprep.subr.mxu1 %v159_v6  ;;  %v156_v12 = vld [vmem:[#allocation7 + $0x50] sm:$0xff]  ;;  %v64_v13 = vld [vmem:[#allocation5 + $0x48] sm:$0xff]  ;;  %v63_v15 = vld [vmem:[#allocation5 + $0x40] sm:$0xff]  ;;  %p334_p1 = scmp.ne.s32.totalorder %s254_s2, %s333_s28  ;;  %p339_p3 = scmp.lt.s32.totalorder %s333_s28, %s333_s28 }
  0x2a   :  { %94 = vmatpush1.msra.mxu0 %v67_v7  ;;  %181 = vmatpush1.msra.mxu1 %v158_v8  ;;  %v155_v14 = vld [vmem:[#allocation7 + $0x48] sm:$0xff]  ;;  %v154_v16 = vld [vmem:[#allocation7 + $0x40] sm:$0xff]  ;;  %v62_v17 = vld [vmem:[#allocation5 + $0x38] sm:$0xff] }
  0x2b   :  { %95 = vmatprep.subr.mxu0 %v66_v9  ;;  %182 = vmatprep.subr.mxu1 %v157_v10  ;;  %v153_v18 = vld [vmem:[#allocation7 + $0x38] sm:$0xff]  ;;  %v61_v19 = vld [vmem:[#allocation5 + $0x30] sm:$0xff]  ;;  %v60_v21 = vld [vmem:[#allocation5 + $0x28] sm:$0xff]  ;;  %p340_p4 = por %p339_p3, %p338_p2 }
  0x2c   :  { %96 = vmatpush1.msra.mxu0 %v65_v11  ;;  %183 = vmatpush1.msra.mxu1 %v156_v12  ;;  %v152_v20 = vld [vmem:[#allocation7 + $0x30] sm:$0xff]  ;;  %v151_v22 = vld [vmem:[#allocation7 + $0x28] sm:$0xff]  ;;  %v59_v23 = vld [vmem:[#allocation5 + $0x20] sm:$0xff] }
  0x2d   :  { %97 = vmatprep.subr.mxu0 %v64_v13  ;;  %184 = vmatprep.subr.mxu1 %v155_v14  ;;  %v150_v24 = vld [vmem:[#allocation7 + $0x20] sm:$0xff]  ;;  %v58_v25 = vld [vmem:[#allocation5 + $0x18] sm:$0xff]  ;;  %v57_v27 = vld [vmem:[#allocation5 + $0x10] sm:$0xff]  ;;  %p341_p5 = pnand %p340_p4, %p334_p1 }
  0x2e   :  { %98 = vmatpush1.msra.mxu0 %v63_v15  ;;  %185 = vmatpush1.msra.mxu1 %v154_v16  ;;  %v149_v26 = vld [vmem:[#allocation7 + $0x18] sm:$0xff]  ;;  %v148_v28 = vld [vmem:[#allocation7 + $0x10] sm:$0xff]  ;;  %v56_v29 = vld [vmem:[#allocation5 + $0x8] sm:$0xff] }
  0x2f   :  { %99 = vmatprep.subr.mxu0 %v62_v17  ;;  %186 = vmatprep.subr.mxu1 %v153_v18  ;;  %v147_v30 = vld [vmem:[#allocation7 + $0x8] sm:$0xff]  ;;  %v55_v31 = vld [vmem:[#allocation5] sm:$0xff]  ;;  %v54_v33 = vld [vmem:[#allocation2] sm:$0x3] }
  0x30   :  { %100 = vmatpush1.msra.mxu0 %v61_v19  ;;  %187 = vmatpush1.msra.mxu1 %v152_v20  ;;  %v146_v32 = vld [vmem:[#allocation7] sm:$0xff] }
  0x31   :  { %101 = vmatprep.subr.mxu0 %v60_v21  ;;  %188 = vmatprep.subr.mxu1 %v151_v22 }
  0x32   :  { %102 = vmatpush1.msra.mxu0 %v59_v23  ;;  %189 = vmatpush1.msra.mxu1 %v150_v24 }
  0x33   :  { %103 = vmatprep.subr.mxu0 %v58_v25  ;;  %190 = vmatprep.subr.mxu1 %v149_v26 }
  0x34   :  { %104 = vmatpush1.msra.mxu0 %v57_v27  ;;  %191 = vmatpush1.msra.mxu1 %v148_v28 }
  0x35   :  { %105 = vmatprep.subr.mxu0 %v56_v29  ;;  %192 = vmatprep.subr.mxu1 %v147_v30 }
  0x36   :  { %106 = vmatpush1.msra.mxu0 %v55_v31  ;;  %193 = vmatpush1.msra.mxu1 %v146_v32 }
  0x37   :  { %263 = vmatmul.mubr.msk.f32.vlgmr.msra.gmra.mxu0 %vm71_vm0, %v54_v33  ;;  %264 = vmatmul.mubr.msk.f32.vlgmr.msra.gmra.mxu1 %vm71_vm0, %v54_v33 }
  0xf7   :  { %v141_v34 = vpop.f32.mrf.mxu0  ;;  %v228_v35 = vpop.f32.mrf.mxu1 }
  0xf8   :  { %v233_v38 = vmul.f32 %v228_v35, %v141_v34 }
  0xf9   :  { %v143_v36 = vpop.f32.mrf.mxu0  ;;  %v230_v37 = vpop.f32.mrf.mxu1 }
  0xfa   :  { %v234_v39 = vmul.f32 %v230_v37, %v143_v36 }
  0xfc   :  { %v237_v40 = vcombine.low %v233_v38, %v234_v39 }
  0xfe   :  { %265 = vst.sshfl [vmem:[#allocation8] sm:$0x33 pattern:$0x76325410] %v237_v40 }
  0xff   :  { %344 = shalt.err (!%p341_p5)
}
 0x100   :  { %256 = dma.vmem_to_hbm [thread:$0]  %s254_s2, 64, %s401_s3, [#allocation4]  }
 0x101   :  { %357 = dma.done.wait [#allocation4], 64  }
 0x102   :  { %358 = vsyncadd [#allocation4], 4294967232 }
 0x103   :  { %260 = vsyncpa [#allocation3], 1 }
 0x104   :  { %261 = vsyncpa [#allocation6], 1 }
 0x105   :  { %262 = vsyncpa [#allocation4], 1 }

</bundles_post_ra>
